<compile_context>
chip_gen: v5e
topology: v5e:2x2
jax: 0.10.0
libtpu: 0.0.40
codegen_flags: <defaults>
</compile_context>

<pallas_src>
import functools

import jax
import jax.numpy as jnp
from jax import lax
from jax.experimental import pallas as pl
from jax.experimental.pallas import tpu as pltpu


_LANE = 128
_SUB_F32 = 8
_TL_FIXED = 2048          # lane-chunk width (multiple of 128)
_TARGET_ELEMS = 1 << 20   # ~4 MiB of f32 per input block
_TM_CAP = 2048            # caps lane-wide scratch at ~7 MiB


def _round_up(v, m):
    return ((v + m - 1) // m) * m


def _ssim_kernel(x_ref, y_ref, o_ref,
                 px_ref, py_ref, sx_ref, sy_ref, sxx_ref, syy_ref, sxy_ref,
                 *, n_elems, tail_valid, C, a, b, c):
    """x_ref/y_ref: (TM, TL) lane chunk; o_ref: (TM, 1).

    px/py: (TM, 128) lane-broadcast pilot values.
    sx..sxy: (TM, 128) lane-wide partial moments of the pilot-shifted data.
    """
    tm, tl = x_ref.shape
    n_slices = tl // _LANE
    k = pl.program_id(1)
    last = pl.num_programs(1) - 1

    @pl.when(k == 0)
    def _init():
        # Pilot = first element of each row (always a valid element).
        px_ref[...] = jnp.broadcast_to(
            x_ref[:, 0:1].astype(jnp.float32), (tm, _LANE))
        py_ref[...] = jnp.broadcast_to(
            y_ref[:, 0:1].astype(jnp.float32), (tm, _LANE))
        zeros = jnp.zeros((tm, _LANE), jnp.float32)
        sx_ref[...] = zeros
        sy_ref[...] = zeros
        sxx_ref[...] = zeros
        syy_ref[...] = zeros
        sxy_ref[...] = zeros

    def _accumulate(valid_lanes):
        px = px_ref[...]
        py = py_ref[...]
        for j in range(n_slices):
            xs = x_ref[:, j * _LANE:(j + 1) * _LANE].astype(jnp.float32) - px
            ys = y_ref[:, j * _LANE:(j + 1) * _LANE].astype(jnp.float32) - py
            if valid_lanes is not None:
                lane = lax.broadcasted_iota(jnp.int32, (tm, _LANE), 1)
                m = (lane + j * _LANE) < valid_lanes
                xs = jnp.where(m, xs, 0.0)
                ys = jnp.where(m, ys, 0.0)
            sx_ref[...] += xs
            sy_ref[...] += ys
            sxx_ref[...] += xs * xs
            syy_ref[...] += ys * ys
            sxy_ref[...] += xs * ys

    if tail_valid is None:
        # L is a multiple of TL: every chunk is full, no masking anywhere.
        _accumulate(None)
    else:
        @pl.when(k != last)
        def _full():
            _accumulate(None)

        @pl.when(k == last)
        def _tail():
            _accumulate(tail_valid)

    @pl.when(k == last)
    def _finalize():
        inv_n = 1.0 / n_elems
        inv_nm1 = 1.0 / max(n_elems - 1.0, 1.0)

        # Single cross-lane reduce per moment, once per row tile.
        sx = jnp.sum(sx_ref[...], axis=-1, keepdims=True)
        sy = jnp.sum(sy_ref[...], axis=-1, keepdims=True)
        sxx = jnp.sum(sxx_ref[...], axis=-1, keepdims=True)
        syy = jnp.sum(syy_ref[...], axis=-1, keepdims=True)
        sxy = jnp.sum(sxy_ref[...], axis=-1, keepdims=True)
        kx = px_ref[:, 0:1]
        ky = py_ref[:, 0:1]

        xmean = kx + sx * inv_n
        ymean = ky + sy * inv_n

        # ---- luminance l(x, y) ----
        meanmin = jnp.minimum(xmean, ymean) - 0.1
        la = xmean - meanmin
        lb = ymean - meanmin
        l_term = (2.0 * la * lb + C) * pl.reciprocal(
            la * la + lb * lb + C, approx=False)

        # ---- contrast c(x, y): unbiased std (ddof=1) like torch.std ----
        xvar = jnp.maximum(sxx - sx * sx * inv_n, 0.0) * inv_nm1
        yvar = jnp.maximum(syy - sy * sy * inv_n, 0.0) * inv_nm1
        xstd = jnp.sqrt(xvar)
        ystd = jnp.sqrt(yvar)
        c_term = (2.0 * xstd * ystd + C) * pl.reciprocal(
            xvar + yvar + C, approx=False)

        # ---- structure s(x, y) ----
        cov = (sxy - sx * sy * inv_n) * inv_nm1
        both_zero = jnp.where((xstd == 0.0) & (ystd == 0.0), 1.0, 0.0)
        s_term = (cov + (C * 0.5) * both_zero) * pl.reciprocal(
            xstd * ystd + C * 0.5, approx=False)

        # Exponents a, b, c default to 1.0 -> skip pow.
        if a != 1.0:
            l_term = l_term ** a
        if b != 1.0:
            c_term = c_term ** b
        if c != 1.0:
            s_term = s_term ** c

        o_ref[...] = (l_term * c_term * s_term).astype(o_ref.dtype)


def ssim(x, y, *, a=1.0, b=1.0, c=1.0, C=1e-5):
    """SSIM over dims (-1, -2); x, y are NCHW. Returns (B, C_ch) float32."""
    assert x.shape == y.shape and x.ndim == 4
    B, Cch, H, W = x.shape
    N = B * Cch
    L = H * W
    x2 = x.reshape(N, L)
    y2 = y.reshape(N, L)

    itemsize = jnp.dtype(x.dtype).itemsize
    sub = _SUB_F32 * max(4 // itemsize, 1)   # f32: 8, bf16: 16, int8/fp8: 32

    # ---- lane tiling: fixed TL + cdiv grid + in-kernel tail masking ----
    TL = min(_TL_FIXED, _round_up(L, _LANE))
    num_l = pl.cdiv(L, TL)
    rem = L % TL
    tail_valid = None if rem == 0 else rem

    # ---- row tiling: ~4 MiB f32 input blocks, >=2 tiles for megacore ----
    TM = max(_TARGET_ELEMS // TL, 1)
    TM = max(sub, min(_round_up(TM, sub), _TM_CAP, _round_up(N, sub)))
    while TM > sub and pl.cdiv(N, TM) < 2:
        TM = max(sub, _round_up(TM // 2, sub))
    num_m = pl.cdiv(N, TM)

    kernel = functools.partial(
        _ssim_kernel, n_elems=float(L), tail_valid=tail_valid,
        C=C, a=a, b=b, c=c)

    out = pl.pallas_call(
        kernel,
        out_shape=jax.ShapeDtypeStruct((N, 1), jnp.float32),
        grid_spec=pltpu.PrefetchScalarGridSpec(
            num_scalar_prefetch=0,
            grid=(num_m, num_l),
            in_specs=[
                pl.BlockSpec((TM, TL), lambda i, k: (i, k)),
                pl.BlockSpec((TM, TL), lambda i, k: (i, k)),
            ],
            out_specs=pl.BlockSpec((TM, 1), lambda i, k: (i, 0)),
            scratch_shapes=[pltpu.VMEM((TM, _LANE), jnp.float32)] * 7,
        ),
        compiler_params=pltpu.CompilerParams(
            dimension_semantics=("parallel", "arbitrary"),
            vmem_limit_bytes=40 * 1024 * 1024,
        ),
    )(x2, y2)

    return out[:N, 0].reshape(B, Cch)


def _ssim_ref(x, y, *, C=1e-5):
    """Pure-JAX reference mirroring the PyTorch module (a=b=c=1)."""
    dims = (-1, -2)
    L = x.shape[-1] * x.shape[-2]
    xm = jnp.mean(x, axis=dims, keepdims=True)
    ym = jnp.mean(y, axis=dims, keepdims=True)
    mm = jnp.minimum(xm, ym) - 0.1
    la, lb = xm - mm, ym - mm
    l_t = (2 * la * lb + C) / (la**2 + lb**2 + C)
    xc, yc = x - xm, y - ym
    xstd = jnp.sqrt(jnp.sum(xc**2, axis=dims, keepdims=True) / (L - 1))
    ystd = jnp.sqrt(jnp.sum(yc**2, axis=dims, keepdims=True) / (L - 1))
    c_t = (2 * xstd * ystd + C) / (xstd**2 + ystd**2 + C)
    cov = jnp.sum(xc * yc, axis=dims, keepdims=True) / (L - 1)
    bz = jnp.where((xstd == 0) & (ystd == 0), 1.0, 0.0)
    s_t = (cov + C * 0.5 * bz) / (xstd * ystd + C * 0.5)
    return (l_t * c_t * s_t).squeeze(dims)


if __name__ == "__main__":
    key = jax.random.PRNGKey(0)
    kx, ky = jax.random.split(key)

    # Small, tile-aligned case (the module's canonical NCHW usage).
    B, Cch, H, W = 2, 4, 16, 16
    x = jax.random.uniform(kx, (B, Cch, H, W), dtype=jnp.float32)
    y = jax.random.uniform(ky, (B, Cch, H, W), dtype=jnp.float32)
    out = ssim(x, y)
    jax.block_until_ready(out)
    ref = _ssim_ref(x, y)
    assert out.shape == (B, Cch), out.shape
    assert jnp.allclose(out, ref, atol=1e-5, rtol=1e-5), (out, ref)

    # Misaligned spatial size -> exercises the in-kernel tail-mask path
    # (L = 2500 -> one full 2048-lane chunk + one masked 452-lane chunk).
    H2, W2 = 50, 50
    x2 = jax.random.uniform(kx, (B, Cch, H2, W2), dtype=jnp.float32)
    y2 = jax.random.uniform(ky, (B, Cch, H2, W2), dtype=jnp.float32)
    out2 = ssim(x2, y2)
    jax.block_until_ready(out2)
    ref2 = _ssim_ref(x2, y2)
    assert out2.shape == (B, Cch), out2.shape
    assert jnp.allclose(out2, ref2, atol=1e-5, rtol=1e-5), (out2, ref2)

    print("KERNEL_OK")
</pallas_src>

<mosaic_0001>
module attributes {stable_mosaic.version = 11 : i64} {
  func.func @_ssim_kernel(%arg0: i32, %arg1: i32, %arg2: memref<8x256xf32, #tpu.memory_space<vmem>>, %arg3: memref<8x256xf32, #tpu.memory_space<vmem>>, %arg4: memref<8x1xf32, #tpu.memory_space<vmem>>, %arg5: memref<8x128xf32, #tpu.memory_space<vmem>>, %arg6: memref<8x128xf32, #tpu.memory_space<vmem>>, %arg7: memref<8x128xf32, #tpu.memory_space<vmem>>, %arg8: memref<8x128xf32, #tpu.memory_space<vmem>>, %arg9: memref<8x128xf32, #tpu.memory_space<vmem>>, %arg10: memref<8x128xf32, #tpu.memory_space<vmem>>, %arg11: memref<8x128xf32, #tpu.memory_space<vmem>>) attributes {dimension_semantics = [#tpu.dimension_semantics<parallel>, #tpu.dimension_semantics<arbitrary>], iteration_bounds = array<i64: 1, 1>, scalar_prefetch = 0 : i64, scratch_operands = 7 : i64, tpu.core_type = #tpu.core_type<tc>, window_params = [{transform_indices = @transform_0, window_bounds = array<i64: 8, 256>}, {transform_indices = @transform_1, window_bounds = array<i64: 8, 256>}, {transform_indices = @transform_2, window_bounds = array<i64: 8, 1>}]} {
    %c0_i32 = arith.constant 0 : i32
    %0 = arith.cmpi eq, %arg1, %c0_i32 : i32
    %1 = arith.extui %0 : i1 to i32
    %c0_i32_0 = arith.constant 0 : i32
    %2 = arith.cmpi ne, %1, %c0_i32_0 : i32
    scf.if %2 {
      %c0_53 = arith.constant 0 : index
      %c0_54 = arith.constant 0 : index
      %52 = vector.load %arg2[%c0_53, %c0_54] : memref<8x256xf32, #tpu.memory_space<vmem>>, vector<8x1xf32>
      %53 = vector.shape_cast %52 : vector<8x1xf32> to vector<8x1xf32>
      %54 = vector.broadcast %53 : vector<8x1xf32> to vector<8x128xf32>
      %c0_55 = arith.constant 0 : index
      %c0_56 = arith.constant 0 : index
      %55 = vector.load %arg5[%c0_55, %c0_56] : memref<8x128xf32, #tpu.memory_space<vmem>>, vector<8x128xf32>
      tpu.vector_store %arg5[%c0_55, %c0_56], %54 {strides = array<i32>} : memref<8x128xf32, #tpu.memory_space<vmem>>, vector<8x128xf32>,
      %c0_57 = arith.constant 0 : index
      %c0_58 = arith.constant 0 : index
      %56 = vector.load %arg3[%c0_57, %c0_58] : memref<8x256xf32, #tpu.memory_space<vmem>>, vector<8x1xf32>
      %57 = vector.shape_cast %56 : vector<8x1xf32> to vector<8x1xf32>
      %58 = vector.broadcast %57 : vector<8x1xf32> to vector<8x128xf32>
      %c0_59 = arith.constant 0 : index
      %c0_60 = arith.constant 0 : index
      %59 = vector.load %arg6[%c0_59, %c0_60] : memref<8x128xf32, #tpu.memory_space<vmem>>, vector<8x128xf32>
      tpu.vector_store %arg6[%c0_59, %c0_60], %58 {strides = array<i32>} : memref<8x128xf32, #tpu.memory_space<vmem>>, vector<8x128xf32>,
      %cst = arith.constant 0.000000e+00 : f32
      %60 = vector.broadcast %cst : f32 to vector<8x128xf32>
      %c0_61 = arith.constant 0 : index
      %c0_62 = arith.constant 0 : index
      %61 = vector.load %arg7[%c0_61, %c0_62] : memref<8x128xf32, #tpu.memory_space<vmem>>, vector<8x128xf32>
      tpu.vector_store %arg7[%c0_61, %c0_62], %60 {strides = array<i32>} : memref<8x128xf32, #tpu.memory_space<vmem>>, vector<8x128xf32>,
      %c0_63 = arith.constant 0 : index
      %c0_64 = arith.constant 0 : index
      %62 = vector.load %arg8[%c0_63, %c0_64] : memref<8x128xf32, #tpu.memory_space<vmem>>, vector<8x128xf32>
      tpu.vector_store %arg8[%c0_63, %c0_64], %60 {strides = array<i32>} : memref<8x128xf32, #tpu.memory_space<vmem>>, vector<8x128xf32>,
      %c0_65 = arith.constant 0 : index
      %c0_66 = arith.constant 0 : index
      %63 = vector.load %arg9[%c0_65, %c0_66] : memref<8x128xf32, #tpu.memory_space<vmem>>, vector<8x128xf32>
      tpu.vector_store %arg9[%c0_65, %c0_66], %60 {strides = array<i32>} : memref<8x128xf32, #tpu.memory_space<vmem>>, vector<8x128xf32>,
      %c0_67 = arith.constant 0 : index
      %c0_68 = arith.constant 0 : index
      %64 = vector.load %arg10[%c0_67, %c0_68] : memref<8x128xf32, #tpu.memory_space<vmem>>, vector<8x128xf32>
      tpu.vector_store %arg10[%c0_67, %c0_68], %60 {strides = array<i32>} : memref<8x128xf32, #tpu.memory_space<vmem>>, vector<8x128xf32>,
      %c0_69 = arith.constant 0 : index
      %c0_70 = arith.constant 0 : index
      %65 = vector.load %arg11[%c0_69, %c0_70] : memref<8x128xf32, #tpu.memory_space<vmem>>, vector<8x128xf32>
      tpu.vector_store %arg11[%c0_69, %c0_70], %60 {strides = array<i32>} : memref<8x128xf32, #tpu.memory_space<vmem>>, vector<8x128xf32>,
    } else {
    }
    %c0 = arith.constant 0 : index
    %c0_1 = arith.constant 0 : index
    %3 = vector.load %arg5[%c0, %c0_1] : memref<8x128xf32, #tpu.memory_space<vmem>>, vector<8x128xf32>
    %c0_2 = arith.constant 0 : index
    %c0_3 = arith.constant 0 : index
    %4 = vector.load %arg6[%c0_2, %c0_3] : memref<8x128xf32, #tpu.memory_space<vmem>>, vector<8x128xf32>
    %c0_4 = arith.constant 0 : index
    %c0_5 = arith.constant 0 : index
    %5 = vector.load %arg2[%c0_4, %c0_5] : memref<8x256xf32, #tpu.memory_space<vmem>>, vector<8x128xf32>
    %6 = arith.subf %5, %3 : vector<8x128xf32>
    %c0_6 = arith.constant 0 : index
    %c0_7 = arith.constant 0 : index
    %7 = vector.load %arg3[%c0_6, %c0_7] : memref<8x256xf32, #tpu.memory_space<vmem>>, vector<8x128xf32>
    %8 = arith.subf %7, %4 : vector<8x128xf32>
    %c0_8 = arith.constant 0 : index
    %c0_9 = arith.constant 0 : index
    %9 = vector.load %arg7[%c0_8, %c0_9] : memref<8x128xf32, #tpu.memory_space<vmem>>, vector<8x128xf32>
    %10 = arith.addf %9, %6 : vector<8x128xf32>
    %c0_10 = arith.constant 0 : index
    %c0_11 = arith.constant 0 : index
    %11 = vector.load %arg7[%c0_10, %c0_11] : memref<8x128xf32, #tpu.memory_space<vmem>>, vector<8x128xf32>
    tpu.vector_store %arg7[%c0_10, %c0_11], %10 {strides = array<i32>} : memref<8x128xf32, #tpu.memory_space<vmem>>, vector<8x128xf32>,
    %c0_12 = arith.constant 0 : index
    %c0_13 = arith.constant 0 : index
    %12 = vector.load %arg8[%c0_12, %c0_13] : memref<8x128xf32, #tpu.memory_space<vmem>>, vector<8x128xf32>
    %13 = arith.addf %12, %8 : vector<8x128xf32>
    %c0_14 = arith.constant 0 : index
    %c0_15 = arith.constant 0 : index
    %14 = vector.load %arg8[%c0_14, %c0_15] : memref<8x128xf32, #tpu.memory_space<vmem>>, vector<8x128xf32>
    tpu.vector_store %arg8[%c0_14, %c0_15], %13 {strides = array<i32>} : memref<8x128xf32, #tpu.memory_space<vmem>>, vector<8x128xf32>,
    %c0_16 = arith.constant 0 : index
    %c0_17 = arith.constant 0 : index
    %15 = vector.load %arg9[%c0_16, %c0_17] : memref<8x128xf32, #tpu.memory_space<vmem>>, vector<8x128xf32>
    %16 = arith.mulf %6, %6 : vector<8x128xf32>
    %17 = arith.addf %15, %16 : vector<8x128xf32>
    %c0_18 = arith.constant 0 : index
    %c0_19 = arith.constant 0 : index
    %18 = vector.load %arg9[%c0_18, %c0_19] : memref<8x128xf32, #tpu.memory_space<vmem>>, vector<8x128xf32>
    tpu.vector_store %arg9[%c0_18, %c0_19], %17 {strides = array<i32>} : memref<8x128xf32, #tpu.memory_space<vmem>>, vector<8x128xf32>,
    %c0_20 = arith.constant 0 : index
    %c0_21 = arith.constant 0 : index
    %19 = vector.load %arg10[%c0_20, %c0_21] : memref<8x128xf32, #tpu.memory_space<vmem>>, vector<8x128xf32>
    %20 = arith.mulf %8, %8 : vector<8x128xf32>
    %21 = arith.addf %19, %20 : vector<8x128xf32>
    %c0_22 = arith.constant 0 : index
    %c0_23 = arith.constant 0 : index
    %22 = vector.load %arg10[%c0_22, %c0_23] : memref<8x128xf32, #tpu.memory_space<vmem>>, vector<8x128xf32>
    tpu.vector_store %arg10[%c0_22, %c0_23], %21 {strides = array<i32>} : memref<8x128xf32, #tpu.memory_space<vmem>>, vector<8x128xf32>,
    %c0_24 = arith.constant 0 : index
    %c0_25 = arith.constant 0 : index
    %23 = vector.load %arg11[%c0_24, %c0_25] : memref<8x128xf32, #tpu.memory_space<vmem>>, vector<8x128xf32>
    %24 = arith.mulf %6, %8 : vector<8x128xf32>
    %25 = arith.addf %23, %24 : vector<8x128xf32>
    %c0_26 = arith.constant 0 : index
    %c0_27 = arith.constant 0 : index
    %26 = vector.load %arg11[%c0_26, %c0_27] : memref<8x128xf32, #tpu.memory_space<vmem>>, vector<8x128xf32>
    tpu.vector_store %arg11[%c0_26, %c0_27], %25 {strides = array<i32>} : memref<8x128xf32, #tpu.memory_space<vmem>>, vector<8x128xf32>,
    %c0_28 = arith.constant 0 : index
    %c128 = arith.constant 128 : index
    %27 = vector.load %arg2[%c0_28, %c128] : memref<8x256xf32, #tpu.memory_space<vmem>>, vector<8x128xf32>
    %28 = arith.subf %27, %3 : vector<8x128xf32>
    %c0_29 = arith.constant 0 : index
    %c128_30 = arith.constant 128 : index
    %29 = vector.load %arg3[%c0_29, %c128_30] : memref<8x256xf32, #tpu.memory_space<vmem>>, vector<8x128xf32>
    %30 = arith.subf %29, %4 : vector<8x128xf32>
    %c0_31 = arith.constant 0 : index
    %c0_32 = arith.constant 0 : index
    %31 = vector.load %arg7[%c0_31, %c0_32] : memref<8x128xf32, #tpu.memory_space<vmem>>, vector<8x128xf32>
    %32 = arith.addf %31, %28 : vector<8x128xf32>
    %c0_33 = arith.constant 0 : index
    %c0_34 = arith.constant 0 : index
    %33 = vector.load %arg7[%c0_33, %c0_34] : memref<8x128xf32, #tpu.memory_space<vmem>>, vector<8x128xf32>
    tpu.vector_store %arg7[%c0_33, %c0_34], %32 {strides = array<i32>} : memref<8x128xf32, #tpu.memory_space<vmem>>, vector<8x128xf32>,
    %c0_35 = arith.constant 0 : index
    %c0_36 = arith.constant 0 : index
    %34 = vector.load %arg8[%c0_35, %c0_36] : memref<8x128xf32, #tpu.memory_space<vmem>>, vector<8x128xf32>
    %35 = arith.addf %34, %30 : vector<8x128xf32>
    %c0_37 = arith.constant 0 : index
    %c0_38 = arith.constant 0 : index
    %36 = vector.load %arg8[%c0_37, %c0_38] : memref<8x128xf32, #tpu.memory_space<vmem>>, vector<8x128xf32>
    tpu.vector_store %arg8[%c0_37, %c0_38], %35 {strides = array<i32>} : memref<8x128xf32, #tpu.memory_space<vmem>>, vector<8x128xf32>,
    %c0_39 = arith.constant 0 : index
    %c0_40 = arith.constant 0 : index
    %37 = vector.load %arg9[%c0_39, %c0_40] : memref<8x128xf32, #tpu.memory_space<vmem>>, vector<8x128xf32>
    %38 = arith.mulf %28, %28 : vector<8x128xf32>
    %39 = arith.addf %37, %38 : vector<8x128xf32>
    %c0_41 = arith.constant 0 : index
    %c0_42 = arith.constant 0 : index
    %40 = vector.load %arg9[%c0_41, %c0_42] : memref<8x128xf32, #tpu.memory_space<vmem>>, vector<8x128xf32>
    tpu.vector_store %arg9[%c0_41, %c0_42], %39 {strides = array<i32>} : memref<8x128xf32, #tpu.memory_space<vmem>>, vector<8x128xf32>,
    %c0_43 = arith.constant 0 : index
    %c0_44 = arith.constant 0 : index
    %41 = vector.load %arg10[%c0_43, %c0_44] : memref<8x128xf32, #tpu.memory_space<vmem>>, vector<8x128xf32>
    %42 = arith.mulf %30, %30 : vector<8x128xf32>
    %43 = arith.addf %41, %42 : vector<8x128xf32>
    %c0_45 = arith.constant 0 : index
    %c0_46 = arith.constant 0 : index
    %44 = vector.load %arg10[%c0_45, %c0_46] : memref<8x128xf32, #tpu.memory_space<vmem>>, vector<8x128xf32>
    tpu.vector_store %arg10[%c0_45, %c0_46], %43 {strides = array<i32>} : memref<8x128xf32, #tpu.memory_space<vmem>>, vector<8x128xf32>,
    %c0_47 = arith.constant 0 : index
    %c0_48 = arith.constant 0 : index
    %45 = vector.load %arg11[%c0_47, %c0_48] : memref<8x128xf32, #tpu.memory_space<vmem>>, vector<8x128xf32>
    %46 = arith.mulf %28, %30 : vector<8x128xf32>
    %47 = arith.addf %45, %46 : vector<8x128xf32>
    %c0_49 = arith.constant 0 : index
    %c0_50 = arith.constant 0 : index
    %48 = vector.load %arg11[%c0_49, %c0_50] : memref<8x128xf32, #tpu.memory_space<vmem>>, vector<8x128xf32>
    tpu.vector_store %arg11[%c0_49, %c0_50], %47 {strides = array<i32>} : memref<8x128xf32, #tpu.memory_space<vmem>>, vector<8x128xf32>,
    %c0_i32_51 = arith.constant 0 : i32
    %49 = arith.cmpi eq, %arg1, %c0_i32_51 : i32
    %50 = arith.extui %49 : i1 to i32
    %c0_i32_52 = arith.constant 0 : i32
    %51 = arith.cmpi ne, %50, %c0_i32_52 : i32
    scf.if %51 {
      %c0_53 = arith.constant 0 : index
      %c0_54 = arith.constant 0 : index
      %52 = vector.load %arg7[%c0_53, %c0_54] : memref<8x128xf32, #tpu.memory_space<vmem>>, vector<8x128xf32>
      %cst = arith.constant dense<0.000000e+00> : vector<8xf32>
      %53 = vector.multi_reduction <add>, %52, %cst [1] : vector<8x128xf32> to vector<8xf32>
      %54 = vector.shape_cast %53 : vector<8xf32> to vector<8x1xf32>
      %c0_55 = arith.constant 0 : index
      %c0_56 = arith.constant 0 : index
      %55 = vector.load %arg8[%c0_55, %c0_56] : memref<8x128xf32, #tpu.memory_space<vmem>>, vector<8x128xf32>
      %cst_57 = arith.constant dense<0.000000e+00> : vector<8xf32>
      %56 = vector.multi_reduction <add>, %55, %cst_57 [1] : vector<8x128xf32> to vector<8xf32>
      %57 = vector.shape_cast %56 : vector<8xf32> to vector<8x1xf32>
      %c0_58 = arith.constant 0 : index
      %c0_59 = arith.constant 0 : index
      %58 = vector.load %arg9[%c0_58, %c0_59] : memref<8x128xf32, #tpu.memory_space<vmem>>, vector<8x128xf32>
      %cst_60 = arith.constant dense<0.000000e+00> : vector<8xf32>
      %59 = vector.multi_reduction <add>, %58, %cst_60 [1] : vector<8x128xf32> to vector<8xf32>
      %60 = vector.shape_cast %59 : vector<8xf32> to vector<8x1xf32>
      %c0_61 = arith.constant 0 : index
      %c0_62 = arith.constant 0 : index
      %61 = vector.load %arg10[%c0_61, %c0_62] : memref<8x128xf32, #tpu.memory_space<vmem>>, vector<8x128xf32>
      %cst_63 = arith.constant dense<0.000000e+00> : vector<8xf32>
      %62 = vector.multi_reduction <add>, %61, %cst_63 [1] : vector<8x128xf32> to vector<8xf32>
      %63 = vector.shape_cast %62 : vector<8xf32> to vector<8x1xf32>
      %c0_64 = arith.constant 0 : index
      %c0_65 = arith.constant 0 : index
      %64 = vector.load %arg11[%c0_64, %c0_65] : memref<8x128xf32, #tpu.memory_space<vmem>>, vector<8x128xf32>
      %cst_66 = arith.constant dense<0.000000e+00> : vector<8xf32>
      %65 = vector.multi_reduction <add>, %64, %cst_66 [1] : vector<8x128xf32> to vector<8xf32>
      %66 = vector.shape_cast %65 : vector<8xf32> to vector<8x1xf32>
      %c0_67 = arith.constant 0 : index
      %c0_68 = arith.constant 0 : index
      %67 = vector.load %arg5[%c0_67, %c0_68] : memref<8x128xf32, #tpu.memory_space<vmem>>, vector<8x1xf32>
      %c0_69 = arith.constant 0 : index
      %c0_70 = arith.constant 0 : index
      %68 = vector.load %arg6[%c0_69, %c0_70] : memref<8x128xf32, #tpu.memory_space<vmem>>, vector<8x1xf32>
      %cst_71 = arith.constant 3.906250e-03 : f32
      %69 = vector.broadcast %cst_71 : f32 to vector<8x1xf32>
      %70 = arith.mulf %54, %69 : vector<8x1xf32>
      %71 = arith.addf %67, %70 : vector<8x1xf32>
      %cst_72 = arith.constant 3.906250e-03 : f32
      %72 = vector.broadcast %cst_72 : f32 to vector<8x1xf32>
      %73 = arith.mulf %57, %72 : vector<8x1xf32>
      %74 = arith.addf %68, %73 : vector<8x1xf32>
      %75 = arith.minimumf %71, %74 : vector<8x1xf32>
      %cst_73 = arith.constant 1.000000e-01 : f32
      %76 = vector.broadcast %cst_73 : f32 to vector<8x1xf32>
      %77 = arith.subf %75, %76 : vector<8x1xf32>
      %78 = arith.subf %71, %77 : vector<8x1xf32>
      %79 = arith.subf %74, %77 : vector<8x1xf32>
      %cst_74 = arith.constant 2.000000e+00 : f32
      %80 = vector.broadcast %cst_74 : f32 to vector<8x1xf32>
      %81 = arith.mulf %80, %78 : vector<8x1xf32>
      %82 = arith.mulf %81, %79 : vector<8x1xf32>
      %cst_75 = arith.constant 9.99999974E-6 : f32
      %83 = vector.broadcast %cst_75 : f32 to vector<8x1xf32>
      %84 = arith.addf %82, %83 : vector<8x1xf32>
      %85 = arith.mulf %78, %78 : vector<8x1xf32>
      %86 = arith.mulf %79, %79 : vector<8x1xf32>
      %87 = arith.addf %85, %86 : vector<8x1xf32>
      %cst_76 = arith.constant 9.99999974E-6 : f32
      %88 = vector.broadcast %cst_76 : f32 to vector<8x1xf32>
      %89 = arith.addf %87, %88 : vector<8x1xf32>
      %90 = tpu.reciprocal %89 : vector<8x1xf32> -> vector<8x1xf32>
      %91 = arith.mulf %84, %90 : vector<8x1xf32>
      %92 = arith.mulf %54, %54 : vector<8x1xf32>
      %cst_77 = arith.constant 3.906250e-03 : f32
      %93 = vector.broadcast %cst_77 : f32 to vector<8x1xf32>
      %94 = arith.mulf %92, %93 : vector<8x1xf32>
      %95 = arith.subf %60, %94 : vector<8x1xf32>
      %cst_78 = arith.constant 0.000000e+00 : f32
      %96 = vector.broadcast %cst_78 : f32 to vector<8x1xf32>
      %97 = arith.maximumf %95, %96 : vector<8x1xf32>
      %cst_79 = arith.constant 0.00392156886 : f32
      %98 = vector.broadcast %cst_79 : f32 to vector<8x1xf32>
      %99 = arith.mulf %97, %98 : vector<8x1xf32>
      %100 = arith.mulf %57, %57 : vector<8x1xf32>
      %cst_80 = arith.constant 3.906250e-03 : f32
      %101 = vector.broadcast %cst_80 : f32 to vector<8x1xf32>
      %102 = arith.mulf %100, %101 : vector<8x1xf32>
      %103 = arith.subf %63, %102 : vector<8x1xf32>
      %cst_81 = arith.constant 0.000000e+00 : f32
      %104 = vector.broadcast %cst_81 : f32 to vector<8x1xf32>
      %105 = arith.maximumf %103, %104 : vector<8x1xf32>
      %cst_82 = arith.constant 0.00392156886 : f32
      %106 = vector.broadcast %cst_82 : f32 to vector<8x1xf32>
      %107 = arith.mulf %105, %106 : vector<8x1xf32>
      %108 = math.sqrt %99 : vector<8x1xf32>
      %109 = math.sqrt %107 : vector<8x1xf32>
      %cst_83 = arith.constant 2.000000e+00 : f32
      %110 = vector.broadcast %cst_83 : f32 to vector<8x1xf32>
      %111 = arith.mulf %110, %108 : vector<8x1xf32>
      %112 = arith.mulf %111, %109 : vector<8x1xf32>
      %cst_84 = arith.constant 9.99999974E-6 : f32
      %113 = vector.broadcast %cst_84 : f32 to vector<8x1xf32>
      %114 = arith.addf %112, %113 : vector<8x1xf32>
      %115 = arith.addf %99, %107 : vector<8x1xf32>
      %cst_85 = arith.constant 9.99999974E-6 : f32
      %116 = vector.broadcast %cst_85 : f32 to vector<8x1xf32>
      %117 = arith.addf %115, %116 : vector<8x1xf32>
      %118 = tpu.reciprocal %117 : vector<8x1xf32> -> vector<8x1xf32>
      %119 = arith.mulf %114, %118 : vector<8x1xf32>
      %120 = arith.mulf %54, %57 : vector<8x1xf32>
      %cst_86 = arith.constant 3.906250e-03 : f32
      %121 = vector.broadcast %cst_86 : f32 to vector<8x1xf32>
      %122 = arith.mulf %120, %121 : vector<8x1xf32>
      %123 = arith.subf %66, %122 : vector<8x1xf32>
      %cst_87 = arith.constant 0.00392156886 : f32
      %124 = vector.broadcast %cst_87 : f32 to vector<8x1xf32>
      %125 = arith.mulf %123, %124 : vector<8x1xf32>
      %cst_88 = arith.constant 0.000000e+00 : f32
      %126 = vector.broadcast %cst_88 : f32 to vector<8x1xf32>
      %127 = arith.cmpf oeq, %108, %126 : vector<8x1xf32>
      %cst_89 = arith.constant 0.000000e+00 : f32
      %128 = vector.broadcast %cst_89 : f32 to vector<8x1xf32>
      %129 = arith.cmpf oeq, %109, %128 : vector<8x1xf32>
      %130 = arith.andi %127, %129 : vector<8x1xi1>
      %cst_90 = arith.constant 1.000000e+00 : f32
      %cst_91 = arith.constant 0.000000e+00 : f32
      %131 = vector.broadcast %cst_90 : f32 to vector<8x1xf32>
      %132 = vector.broadcast %cst_91 : f32 to vector<8x1xf32>
      %133 = arith.select %130, %131, %132 : vector<8x1xi1>, vector<8x1xf32>
      %cst_92 = arith.constant 5.000000e-06 : f32
      %134 = vector.broadcast %cst_92 : f32 to vector<8x1xf32>
      %135 = arith.mulf %134, %133 : vector<8x1xf32>
      %136 = arith.addf %125, %135 : vector<8x1xf32>
      %137 = arith.mulf %108, %109 : vector<8x1xf32>
      %cst_93 = arith.constant 5.000000e-06 : f32
      %138 = vector.broadcast %cst_93 : f32 to vector<8x1xf32>
      %139 = arith.addf %137, %138 : vector<8x1xf32>
      %140 = tpu.reciprocal %139 : vector<8x1xf32> -> vector<8x1xf32>
      %141 = arith.mulf %136, %140 : vector<8x1xf32>
      %142 = arith.mulf %91, %119 : vector<8x1xf32>
      %143 = arith.mulf %142, %141 : vector<8x1xf32>
      %c0_94 = arith.constant 0 : index
      %c0_95 = arith.constant 0 : index
      %144 = vector.load %arg4[%c0_94, %c0_95] : memref<8x1xf32, #tpu.memory_space<vmem>>, vector<8x1xf32>
      tpu.vector_store %arg4[%c0_94, %c0_95], %143 {strides = array<i32>} : memref<8x1xf32, #tpu.memory_space<vmem>>, vector<8x1xf32>,
    } else {
    }
    return
  }
  func.func @transform_0(%arg0: i32, %arg1: i32) -> (i32, i32) {
    %c0_i32 = arith.constant 0 : i32
    return %arg0, %arg1 : i32, i32
  }
  func.func @transform_1(%arg0: i32, %arg1: i32) -> (i32, i32) {
    %c0_i32 = arith.constant 0 : i32
    return %arg0, %arg1 : i32, i32
  }
  func.func @transform_2(%arg0: i32, %arg1: i32) -> (i32, i32) {
    %c0_i32 = arith.constant 0 : i32
    %c0_i32_0 = arith.constant 0 : i32
    return %arg0, %c0_i32 : i32, i32
  }
}

</mosaic_0001>

<bundles_post_ra>
// kernel: tpu_custom_call.1
= control target key start
LH: loop header
LB: loop body
LE: loop exit
PB: predicated region body
PF: predicated region fallthrough
CT: control target
= control target key end

     0   :  { %7 = vsyncpa [#allocation10], 0  ;;  %s402_s0 = inlined_call_operand.hbm [shape: f32[8,256], index: 0, kind: input, shape index: {}]   ;;  %s403_s1 = inlined_call_operand.hbm [shape: f32[8,256], index: 1, kind: input, shape index: {}]   ;;  %s404_s2 = inlined_call_operand.vmem [shape: f32[8,1], index: 2, kind: output, shape index: {}]  }
   0x1   :  { %s14_s11 = sshll.u32 %s402_s0, 4  ;;  %s15_s11 = int_to_ptr.hbm [resolvable:$true] %s14_s11 }
   0x2   :  { %8 = vsyncpa [#allocation12], 0  ;;  %s317_s12 = smov [#allocation9]   ;;  %s25_s16 = sshll.u32 %s403_s1, 4  ;;  %s26_s16 = int_to_ptr.hbm [resolvable:$true] %s25_s16 }
   0x3   :  { %s16_s13 = sshll.u32 %s317_s12, 4  ;;  %s318_s17 = smov [#allocation11]   ;;  %s17_s13 = int_to_ptr.vmem [resolvable:$true] %s16_s13 }
   0x4   :  { %19 = dma.hbm_to_vmem [thread:$0]  %s15_s11, 256, %s17_s13, [#allocation10]  }
   0x5   :  { %s27_s18 = sshll.u32 %s318_s17, 4  ;;  %s28_s18 = int_to_ptr.vmem [resolvable:$true] %s27_s18 }
   0x6   :  { %30 = dma.hbm_to_vmem [thread:$0]  %s26_s16, 256, %s28_s18, [#allocation12]  }
   0x7   :  { %313 = dma.done.wait [#allocation10], 256  }
   0x8   :  { %314 = vsyncadd [#allocation10], 4294967040 }
   0x9   :  { %315 = dma.done.wait [#allocation12], 256  }
   0xa   :  { %316 = vsyncadd [#allocation12], 4294967040  ;;  %v319_v0 = vmov 0   ;;  %v43_v1 = vld [vmem:[#allocation9] sm:$0xff]  ;;  %v50_v2 = vld [vmem:[#allocation11] sm:$0xff] }
   0xb   :  { %254 = vset.pattern.permute.xlu0 %v319_v0  ;;  %v86_v3 = vld [vmem:[#allocation9 + $0x8] sm:$0xff]  ;;  %v88_v11 = vld [vmem:[#allocation11 + $0x8] sm:$0xff] }
   0xc   :  { %46 = vperm.xlu0 %254, %v43_v1  }
  0x14   :  { %53 = vperm.xlu0 %254, %v50_v2  }
  0x7e   :  { %v47_v4 = vpop.permute.xlu0 %46 }
  0x7f   :  { %v65_v5 = vsub.f32 %v43_v1, %v47_v4  ;;  %v87_v6 = vsub.f32 %v86_v3, %v47_v4 }
  0x81   :  { %v91_v7 = vadd.f32 %v87_v6, %v65_v5  ;;  %v75_v8 = vmul.f32 %v65_v5, %v65_v5  ;;  %v97_v9 = vmul.f32 %v87_v6, %v87_v6 }
  0x83   :  { %112 = vadd.xlane.f32.xlu1 %v91_v7  ;;  %v98_v10 = vadd.f32 %v97_v9, %v75_v8 }
  0x85   :  { %118 = vadd.xlane.f32.xlu2 %v98_v10 }
  0x86   :  { %v54_v12 = vpop.permute.xlu0 %53 }
  0x87   :  { %v67_v13 = vsub.f32 %v50_v2, %v54_v12  ;;  %v89_v14 = vsub.f32 %v88_v11, %v54_v12 }
  0x89   :  { %v94_v15 = vadd.f32 %v89_v14, %v67_v13  ;;  %v83_v16 = vmul.f32 %v67_v13, %v65_v5  ;;  %v105_v17 = vmul.f32 %v89_v14, %v87_v6  ;;  %v79_v18 = vmul.f32 %v67_v13, %v67_v13 }
  0x8a   :  { %v101_v19 = vmul.f32 %v89_v14, %v89_v14 }
  0x8b   :  { %115 = vadd.xlane.f32.xlu1 %v94_v15  ;;  %v106_v20 = vadd.f32 %v105_v17, %v83_v16 }
  0x8c   :  { %v102_v21 = vadd.f32 %v101_v19, %v79_v18 }
  0x8d   :  { %124 = vadd.xlane.f32.xlu0 %v106_v20 }
  0x8e   :  { %121 = vadd.xlane.f32.xlu2 %v102_v21 }
  0xf6   :  { %v342_v22 = vpop.xlane.xlu1 %112 }
  0xf7   :  { %v158_v23 = vmul.f32 %v342_v22, %v342_v22  ;;  %v128_v28 = vmul.f32 0.00390625, %v342_v22 }
  0xf8   :  { %v119_v25 = vpop.xlane.xlu2 %118 }
  0xf9   :  { %v159_v24 = vmul.f32 0.00390625, %v158_v23  ;;  %v129_v33 = vadd.f32 %v128_v28, %v47_v4 }
  0xfb   :  { %v160_v26 = vsub.f32 %v119_v25, %v159_v24 }
  0xfd   :  { %v161_v27 = vmax.f32 %v160_v26, 0.0 }
  0xfe   :  { %v116_v29 = vpop.xlane.xlu1 %115 }
  0xff   :  { %v162_v30 = vmul.f32 0.003921569, %v161_v27  ;;  %v130_v31 = vmul.f32 0.00390625, %v116_v29  ;;  %v163_v32 = vmul.f32 %v116_v29, %v116_v29  ;;  %v212_v14 = vmul.f32 %v116_v29, %v342_v22 }
 0x100   :  { %v125_v29 = vpop.xlane.xlu0 %124 }
 0x101   :  { %255 = vrsqrt.f32 %v162_v30  ;;  %v131_v34 = vadd.f32 %v130_v31, %v54_v12  ;;  %v164_v35 = vmul.f32 0.00390625, %v163_v32  ;;  %v122_v36 = vpop.xlane.xlu2 %121  ;;  %vm175_vm0 = vcmp.eq.f32.partialorder %v162_v30, inf }
 0x102   :  { %v178_v3 = vand.u32 2147483648, %v162_v30  ;;  %vm177_vm3 = vcmp.eq.f32.partialorder %v162_v30, 0.0  ;;  %v213_v18 = vmul.f32 0.00390625, %v212_v14 }
 0x103   :  { %v132_v37 = vmin.f32 %v129_v33, %v131_v34  ;;  %v165_v38 = vsub.f32 %v122_v36, %v164_v35  ;;  %v320_v35 = vmov 0.0  }
 0x105   :  { %v249_v39 = vadd.f32 -0.1, %v132_v37  ;;  %v166_v40 = vmax.f32 %v165_v38, 0.0 }
 0x107   :  { %v256_v41 = vpop.eup %255  ;;  %v134_v43 = vsub.f32 %v129_v33, %v249_v39  ;;  %v347_v44 = vsub.f32 %v131_v34, %v249_v39  ;;  %v167_v45 = vmul.f32 0.003921569, %v166_v40  ;;  %v214_v33 = vsub.f32 %v125_v29, %v213_v18 }
 0x108   :  { %v169_v42 = vmul.f32 %v256_v41, %v162_v30 }
 0x109   :  { %v139_v47 = vmul.f32 %v134_v43, %v134_v43  ;;  %v140_v48 = vmul.f32 %v347_v44, %v347_v44  ;;  %257 = vrsqrt.f32 %v167_v45  ;;  %v195_v51 = vadd.f32 %v167_v45, %v162_v30 }
 0x10a   :  { %v170_v46 = vmul.f32 %v256_v41, %v169_v42  ;;  %vm187_vm1 = vcmp.eq.f32.partialorder %v167_v45, inf  ;;  %v190_v4 = vand.u32 2147483648, %v167_v45  ;;  %vm189_vm2 = vcmp.eq.f32.partialorder %v167_v45, 0.0 }
 0x10b   :  { %v141_v49 = vadd.f32 %v140_v48, %v139_v47  ;;  %v353_v55 = vadd.f32 1e-05, %v195_v51  ;;  %v136_v19 = vmul.f32 2.0, %v134_v43  ;;  %v215_v48 = vmul.f32 0.003921569, %v214_v33 }
 0x10c   :  { %v171_v50 = vmul.f32 0.5, %v170_v46 }
 0x10d   :  { %v351_v52 = vadd.f32 1e-05, %v141_v49  ;;  %v206_v26 = vand.u32 2147483647, %v353_v55  ;;  %v208_v27 = vand.u32 2147483648, %v353_v55  ;;  %vm202_vm11 = vweird.f32 %v353_v55 }
 0x10e   :  { %v172_v54 = vsub.f32 1.5, %v171_v50  ;;  %v137_v31 = vmul.f32 %v136_v19, %v347_v44 }
 0x10f   :  { %v258_v53 = vpop.eup %257  ;;  %259 = vrcp.f32 %v351_v52  ;;  %v152_v20 = vand.u32 2147483647, %v351_v52  ;;  %vm148_vm9 = vweird.f32 %v351_v52  ;;  %v154_v25 = vand.u32 2147483648, %v351_v52 }
 0x110   :  { %v181_v56 = vmul.f32 %v258_v53, %v167_v45  ;;  %v173_v58 = vmul.f32 %v256_v41, %v172_v54  ;;  %261 = vrcp.f32 %v353_v55  ;;  %vm207_vm14 = vcmp.eq.f32.partialorder %v206_v26, 8.507059e+37 }
 0x111   :  { %vm383_vm12 = vcmp.eq.f32.partialorder %v152_v20, 8.507059e+37  ;;  %v155_v41 = vor.u32 1.1754944e-38, %v154_v25  ;;  %v209_v42 = vor.u32 1.1754944e-38, %v208_v27  ;;  %v138_v50 = vadd.f32 1e-05, %v137_v31 }
 0x112   :  { %v182_v57 = vmul.f32 %v258_v53, %v181_v56  ;;  %v174_v61 = vmul.f32 %v173_v58, %v162_v30 }
 0x114   :  { %v183_v59 = vmul.f32 0.5, %v182_v57  ;;  %v176_v2 = vsel %vm175_vm0, %v162_v30, %v174_v61 }
 0x115   :  { %v357_v62 = vpop.eup %259  ;;  %v179_v9 = vsel %vm177_vm3, %v178_v3, %v176_v2  ;;  %vm241_vm3 = vcmask 7168  }
 0x116   :  { %v184_v60 = vsub.f32 1.5, %v183_v59  ;;  %v359_v0 = vpop.eup %261  ;;  %v144_v5 = vmul.f32 %v357_v62, %v351_v52  ;;  %v192_v17 = vmul.f32 2.0, %v179_v9  ;;  %vm216_vm5 = vcmp.eq.f32.partialorder %v179_v9, 0.0 }
 0x117   :  { %v198_v7 = vmul.f32 %v359_v0, %v353_v55  ;;  %vm149_vm6 = vweird.f32 %v357_v62  ;;  %vm203_vm7 = vweird.f32 %v359_v0 }
 0x118   :  { %v185_v63 = vmul.f32 %v258_v53, %v184_v60  ;;  %v145_v11 = vsub.f32 1.0, %v144_v5  ;;  %vm377_vm10 = vmor %vm148_vm9, %vm149_vm6 }
 0x119   :  { %v199_v12 = vsub.f32 1.0, %v198_v7  ;;  %vm387_vm13 = vmor %vm202_vm11, %vm203_vm7 }
 0x11a   :  { %v186_v1 = vmul.f32 %v185_v63, %v167_v45  ;;  %v146_v15 = vmul.f32 %v357_v62, %v145_v11 }
 0x11b   :  { %v200_v16 = vmul.f32 %v359_v0, %v199_v12 }
 0x11c   :  { %v188_v6 = vsel %vm187_vm1, %v167_v45, %v186_v1  ;;  %v147_v21 = vadd.f32 %v357_v62, %v146_v15 }
 0x11d   :  { %v191_v8 = vsel %vm189_vm2, %v190_v4, %v188_v6  ;;  %v201_v24 = vadd.f32 %v359_v0, %v200_v16 }
 0x11e   :  { %v222_v10 = vmul.f32 %v191_v8, %v179_v9  ;;  %vm217_vm4 = vcmp.eq.f32.partialorder %v191_v8, 0.0  ;;  %v193_v23 = vmul.f32 %v192_v17, %v191_v8  ;;  %v151_v37 = vsel %vm377_vm10, %v357_v62, %v147_v21 }
 0x11f   :  { %vm218_vm8 = vmand %vm216_vm5, %vm217_vm4  ;;  %v205_v39 = vsel %vm387_vm13, %v359_v0, %v201_v24  ;;  %v156_v47 = vsel %vm383_vm12, %v155_v41, %v151_v37 }
 0x120   :  { %v223_v13 = vadd.f32 5e-06, %v222_v10  ;;  %v219_v36 = vsel %vm218_vm8, 1.0, %v320_v35  ;;  %v194_v38 = vadd.f32 1e-05, %v193_v23  ;;  %v210_v49 = vsel %vm207_vm14, %v209_v42, %v205_v39 }
 0x121   :  { %v220_v44 = vmul.f32 5e-06, %v219_v36  ;;  %v157_v54 = vmul.f32 %v156_v47, %v138_v50 }
 0x122   :  { %263 = vrcp.f32 %v223_v13  ;;  %v235_v43 = vand.u32 2147483648, %v223_v13  ;;  %v233_v46 = vand.u32 2147483647, %v223_v13  ;;  %v211_v51 = vmul.f32 %v210_v49, %v194_v38 }
 0x123   :  { %vm229_vm0 = vweird.f32 %v223_v13  ;;  %v221_v55 = vadd.f32 %v220_v44, %v215_v48 }
 0x124   :  { %v236_v53 = vor.u32 1.1754944e-38, %v235_v43  ;;  %vm234_vm2 = vcmp.eq.f32.partialorder %v233_v46, 8.507059e+37  ;;  %v239_v59 = vmul.f32 %v211_v51, %v157_v54 }
 0x128   :  { %v264_v22 = vpop.eup %263 }
 0x129   :  { %v225_v30 = vmul.f32 %v264_v22, %v223_v13  ;;  %vm230_vm15 = vweird.f32 %v264_v22 }
 0x12a   :  { %vm231_vm1 = vmor %vm229_vm0, %vm230_vm15 }
 0x12b   :  { %v226_v40 = vsub.f32 1.0, %v225_v30 }
 0x12d   :  { %v227_v45 = vmul.f32 %v264_v22, %v226_v40 }
 0x12f   :  { %v228_v52 = vadd.f32 %v264_v22, %v227_v45 }
 0x131   :  { %v232_v56 = vsel %vm231_vm1, %v264_v22, %v228_v52 }
 0x132   :  { %v237_v57 = vsel %vm234_vm2, %v236_v53, %v232_v56 }
 0x133   :  { %v238_v58 = vmul.f32 %v237_v57, %v221_v55 }
 0x135   :  { %v240_v60 = vmul.f32 %v239_v59, %v238_v58 }
 0x137   :  { %242 = vst.msk [vmem:[%s404_s2] sm:$0xff] %vm241_vm3, %v240_v60 }
 0x138   :  { %247 = vsyncpa [#allocation10], 1 }
 0x139   :  { %248 = vsyncpa [#allocation12], 1 }

</bundles_post_ra>
